<compile_context>
chip_gen: v6e
topology: v6e:2x2x1
jax: 0.10.0
libtpu: 0.0.40
codegen_flags: <defaults>
</compile_context>

<pallas_src>
import functools

import jax
import jax.numpy as jnp
from jax import lax
from jax.experimental import pallas as pl
from jax.experimental.pallas import tpu as pltpu

_SUB = 32               # sublane extent of one chunk (int8-native packing)
_LANE = 128             # lane extent of one chunk
_CHUNK = _SUB * _LANE   # 4096 elements per (32, 128) chunk


def _focal_partial_kernel(x_ref, t_ref, out_ref, *, gamma, alpha,
                          approx_recip, inner_unroll):
    """Sum-reduce sigmoid focal loss over one (tile, 32, 128) block.

    Accumulates one (32, 128) chunk at a time so per-iteration temporaries
    stay in a handful of vregs instead of full-tile VMEM buffers.
    """
    tile = x_ref.shape[0]

    def body(j, acc):
        x = x_ref[j]                               # (32, 128) f32 logits
        t = t_ref[j].astype(jnp.float32)           # (32, 128) one-hot {0, 1}

        # Share exp(-|x|) between sigmoid(x) and the stable BCE log1p term.
        e = jnp.exp(-jnp.abs(x))
        denom = 1.0 + e
        if approx_recip:
            inv = pl.reciprocal(denom, approx=True)   # EUP vrcp (v7x relief)
        else:
            inv = 1.0 / denom
        p = jnp.where(x >= 0.0, inv, e * inv)         # == sigmoid(x)

        # Stable BCE with logits: max(x, 0) - x*t + log1p(exp(-|x|))
        bce = jnp.maximum(x, 0.0) - x * t + jnp.log1p(e)

        pt = p + t - 2.0 * p * t                      # == (1-p)*t + p*(1-t)
        if gamma == 2.0:
            mod = pt * pt                             # avoid pow -> log+exp on EUP
        elif gamma == 1.0:
            mod = pt
        else:
            mod = jnp.power(pt, gamma)
        fw = ((1.0 - alpha) + (2.0 * alpha - 1.0) * t) * mod  # alpha*t+(1-a)(1-t)
        return acc + bce * fw

    acc0 = jnp.zeros((_SUB, _LANE), jnp.float32)
    unroll = max(1, min(int(inner_unroll), tile))
    out_ref[0] = lax.fori_loop(0, tile, body, acc0, unroll=unroll)


def focal_loss_faw(pred, target, *, gamma=2.0, alpha=0.25, loss_weight=1.0,
                   reduction="mean", avg_factor=None,
                   tile_chunks=256, inner_unroll=2, approx_sigmoid=False):
    """Pallas implementation of FocalLoss_faw.forward (weight=None).

    tile_chunks: (32,128)-chunks per grid step.  Default 256 -> 4 MiB f32
    logits + 1 MiB int8 one-hot per step (~10 MiB double-buffered), which fits
    the default scoped VMEM on v5e/v6e/v7x.  On v7x, 512 is worthwhile if
    vmem_limit_bytes is raised.
    """
    # TODO(synk): reduction='none' and per-sample `weight` need the full (N, C)
    # elementwise loss and are not produced by this sum-reducing kernel.
    assert reduction in ("mean", "sum")
    n, c = pred.shape
    total = n * c

    chunks = pl.cdiv(total, _CHUNK)
    tile = max(1, min(int(tile_chunks), chunks))
    grid = pl.cdiv(chunks, tile)
    tile = pl.cdiv(chunks, grid)          # re-balance: pad waste < grid chunks
    padded_chunks = grid * tile
    padded = padded_chunks * _CHUNK

    # ---- Logits: cast + flatten + tail-pad + 3-D lane-dense view.
    # One chained expression => one producing XLA fusion; the final reshape is
    # a bitcast (minor dims are exact (8,128)-tile multiples).  Padding with
    # -1e4 contributes exactly zero: e = exp(-|x|) = 0, p = 0, bce = 0 (t = 0).
    x3 = jnp.pad(pred.astype(jnp.float32).reshape(-1), (0, padded - total),
                 constant_values=-1e4).reshape(padded_chunks, _SUB, _LANE)

    # ---- One-hot: pad the *labels* (cheap) with value C -> all-zero rows,
    # build int8 one-hot directly at the padded size, slice to exactly
    # `padded` elements.  one_hot(target, C+1)[:, :C] == (label == j), and
    # label == C matches nothing.  int8 is exact for {0, 1}.
    rows_pad = pl.cdiv(padded, c)
    tgt_pad = jnp.pad(target.astype(jnp.int32), (0, rows_pad - n),
                      constant_values=c)
    t_onehot = (tgt_pad[:, None] ==
                jnp.arange(c, dtype=jnp.int32)[None, :]).astype(jnp.int8)
    t3 = t_onehot.reshape(-1)[:padded].reshape(padded_chunks, _SUB, _LANE)

    kernel = functools.partial(_focal_partial_kernel,
                               gamma=float(gamma), alpha=float(alpha),
                               approx_recip=bool(approx_sigmoid),
                               inner_unroll=int(inner_unroll))

    partials = pl.pallas_call(
        kernel,
        out_shape=jax.ShapeDtypeStruct((grid, _SUB, _LANE), jnp.float32),
        grid_spec=pltpu.PrefetchScalarGridSpec(
            num_scalar_prefetch=0,
            grid=(grid,),
            in_specs=[
                pl.BlockSpec((tile, _SUB, _LANE), lambda i: (i, 0, 0)),  # logits
                pl.BlockSpec((tile, _SUB, _LANE), lambda i: (i, 0, 0)),  # one-hot
            ],
            out_specs=pl.BlockSpec((1, _SUB, _LANE), lambda i: (i, 0, 0)),
        ),
        compiler_params=pltpu.CompilerParams(
            dimension_semantics=("parallel",)),
    )(x3, t3)

    loss_sum = jnp.sum(partials)

    if avg_factor is not None:
        assert reduction == "mean", 'avg_factor can not be used with reduction="sum"'
        eps = jnp.finfo(jnp.float32).eps
        loss = loss_sum / (jnp.float32(avg_factor) + eps)
    elif reduction == "mean":
        loss = loss_sum / jnp.float32(total)
    else:  # "sum"
        loss = loss_sum
    return loss_weight * loss


def focal_loss_faw_ref(pred, target, *, gamma=2.0, alpha=0.25, loss_weight=1.0):
    """Pure-JAX reference mirroring the PyTorch py_sigmoid_focal_loss path."""
    n, c = pred.shape
    t = jax.nn.one_hot(target, c + 1, dtype=pred.dtype)[:, :c]
    p = jax.nn.sigmoid(pred)
    pt = (1 - p) * t + p * (1 - t)
    fw = (alpha * t + (1 - alpha) * (1 - t)) * jnp.power(pt, gamma)
    bce = jnp.maximum(pred, 0.0) - pred * t + jnp.log1p(jnp.exp(-jnp.abs(pred)))
    return loss_weight * jnp.mean(bce * fw)


if __name__ == "__main__":
    key = jax.random.PRNGKey(0)
    k1, k2, k3, k4 = jax.random.split(key, 4)

    # Case 1: C = 16; N*C deliberately NOT a multiple of the 32x128 chunk so
    # the in-wrapper ragged/padding path is exercised.
    N1, C1 = 200, 16
    pred1 = jax.random.normal(k1, (N1, C1), dtype=jnp.float32) * 2.0
    target1 = jax.random.randint(k2, (N1,), 0, C1 + 1, dtype=jnp.int32)
    out1 = jax.block_until_ready(focal_loss_faw(pred1, target1))
    ref1 = focal_loss_faw_ref(pred1, target1)
    assert jnp.allclose(out1, ref1, rtol=1e-5, atol=1e-6), (out1, ref1)

    # Case 2: C = 10 does not divide the chunk size -> exercises the padded
    # label / flat-slice one-hot construction.
    N2, C2 = 97, 10
    pred2 = jax.random.normal(k3, (N2, C2), dtype=jnp.float32) * 2.0
    target2 = jax.random.randint(k4, (N2,), 0, C2 + 1, dtype=jnp.int32)
    out2 = jax.block_until_ready(focal_loss_faw(pred2, target2))
    ref2 = focal_loss_faw_ref(pred2, target2)
    assert jnp.allclose(out2, ref2, rtol=1e-5, atol=1e-6), (out2, ref2)

    # Approx-reciprocal sigmoid (v7x EUP relief); ~1e-3 relative error expected.
    out3 = jax.block_until_ready(focal_loss_faw(pred1, target1, approx_sigmoid=True))
    assert jnp.allclose(out3, ref1, rtol=1e-2, atol=1e-4), (out3, ref1)

    print("KERNEL_OK")
</pallas_src>

<mosaic_0001>
module attributes {stable_mosaic.version = 11 : i64} {
  func.func @_focal_partial_kernel(%arg0: i32, %arg1: memref<1x32x128xf32, #tpu.memory_space<vmem>>, %arg2: memref<1x32x128xi8, #tpu.memory_space<vmem>>, %arg3: memref<1x32x128xf32, #tpu.memory_space<vmem>>) attributes {dimension_semantics = [#tpu.dimension_semantics<parallel>], iteration_bounds = array<i64: 1>, scalar_prefetch = 0 : i64, scratch_operands = 0 : i64, tpu.core_type = #tpu.core_type<tc>, window_params = [{transform_indices = @transform_0, window_bounds = array<i64: 1, 32, 128>}, {transform_indices = @transform_1, window_bounds = array<i64: 1, 32, 128>}, {transform_indices = @transform_2, window_bounds = array<i64: 1, 32, 128>}]} {
    %cst = arith.constant 0.000000e+00 : f32
    %0 = vector.broadcast %cst : f32 to vector<32x128xf32>
    %c0_i32 = arith.constant 0 : i32
    %1 = arith.index_cast %c0_i32 : i32 to index
    %c0 = arith.constant 0 : index
    %c0_0 = arith.constant 0 : index
    %2 = vector.load %arg1[%1, %c0, %c0_0] : memref<1x32x128xf32, #tpu.memory_space<vmem>>, vector<1x32x128xf32>
    %3 = vector.shape_cast %2 : vector<1x32x128xf32> to vector<32x128xf32>
    %4 = arith.index_cast %c0_i32 : i32 to index
    %c0_1 = arith.constant 0 : index
    %c0_2 = arith.constant 0 : index
    %5 = vector.load %arg2[%4, %c0_1, %c0_2] : memref<1x32x128xi8, #tpu.memory_space<vmem>>, vector<1x32x128xi8>
    %6 = vector.shape_cast %5 : vector<1x32x128xi8> to vector<32x128xi8>
    %7 = arith.sitofp %6 : vector<32x128xi8> to vector<32x128xf32>
    %8 = math.absf %3 : vector<32x128xf32>
    %cst_3 = arith.constant 0.000000e+00 : f32
    %9 = vector.broadcast %cst_3 : f32 to vector<32x128xf32>
    %10 = arith.subf %9, %8 : vector<32x128xf32>
    %11 = math.exp %10 : vector<32x128xf32>
    %cst_4 = arith.constant 1.000000e+00 : f32
    %12 = vector.broadcast %cst_4 : f32 to vector<32x128xf32>
    %13 = arith.addf %12, %11 : vector<32x128xf32>
    %cst_5 = arith.constant 1.000000e+00 : f32
    %14 = vector.broadcast %cst_5 : f32 to vector<32x128xf32>
    %15 = arith.divf %14, %13 : vector<32x128xf32>
    %cst_6 = arith.constant 0.000000e+00 : f32
    %16 = vector.broadcast %cst_6 : f32 to vector<32x128xf32>
    %17 = arith.cmpf oge, %3, %16 : vector<32x128xf32>
    %18 = arith.mulf %11, %15 : vector<32x128xf32>
    %19 = arith.select %17, %15, %18 : vector<32x128xi1>, vector<32x128xf32>
    %cst_7 = arith.constant 0.000000e+00 : f32
    %20 = vector.broadcast %cst_7 : f32 to vector<32x128xf32>
    %21 = arith.maximumf %3, %20 : vector<32x128xf32>
    %22 = arith.mulf %3, %7 : vector<32x128xf32>
    %23 = arith.subf %21, %22 : vector<32x128xf32>
    %24 = math.log1p %11 : vector<32x128xf32>
    %25 = arith.addf %23, %24 : vector<32x128xf32>
    %26 = arith.addf %19, %7 : vector<32x128xf32>
    %cst_8 = arith.constant 2.000000e+00 : f32
    %27 = vector.broadcast %cst_8 : f32 to vector<32x128xf32>
    %28 = arith.mulf %27, %19 : vector<32x128xf32>
    %29 = arith.mulf %28, %7 : vector<32x128xf32>
    %30 = arith.subf %26, %29 : vector<32x128xf32>
    %31 = arith.mulf %30, %30 : vector<32x128xf32>
    %cst_9 = arith.constant -5.000000e-01 : f32
    %32 = vector.broadcast %cst_9 : f32 to vector<32x128xf32>
    %33 = arith.mulf %32, %7 : vector<32x128xf32>
    %cst_10 = arith.constant 7.500000e-01 : f32
    %34 = vector.broadcast %cst_10 : f32 to vector<32x128xf32>
    %35 = arith.addf %34, %33 : vector<32x128xf32>
    %36 = arith.mulf %35, %31 : vector<32x128xf32>
    %37 = arith.mulf %25, %36 : vector<32x128xf32>
    %38 = arith.addf %0, %37 : vector<32x128xf32>
    %c1_i32 = arith.constant 1 : i32
    %c0_11 = arith.constant 0 : index
    %c0_12 = arith.constant 0 : index
    %c0_13 = arith.constant 0 : index
    %39 = vector.load %arg3[%c0_11, %c0_12, %c0_13] : memref<1x32x128xf32, #tpu.memory_space<vmem>>, vector<1x32x128xf32>
    %40 = vector.shape_cast %39 : vector<1x32x128xf32> to vector<32x128xf32>
    %41 = vector.shape_cast %38 : vector<32x128xf32> to vector<1x32x128xf32>
    tpu.vector_store %arg3[%c0_11, %c0_12, %c0_13], %41 {strides = array<i32>} : memref<1x32x128xf32, #tpu.memory_space<vmem>>, vector<1x32x128xf32>,
    return
  }
  func.func @transform_0(%arg0: i32) -> (i32, i32, i32) {
    %c0_i32 = arith.constant 0 : i32
    %c0_i32_0 = arith.constant 0 : i32
    %c0_i32_1 = arith.constant 0 : i32
    return %arg0, %c0_i32, %c0_i32_0 : i32, i32, i32
  }
  func.func @transform_1(%arg0: i32) -> (i32, i32, i32) {
    %c0_i32 = arith.constant 0 : i32
    %c0_i32_0 = arith.constant 0 : i32
    %c0_i32_1 = arith.constant 0 : i32
    return %arg0, %c0_i32, %c0_i32_0 : i32, i32, i32
  }
  func.func @transform_2(%arg0: i32) -> (i32, i32, i32) {
    %c0_i32 = arith.constant 0 : i32
    %c0_i32_0 = arith.constant 0 : i32
    %c0_i32_1 = arith.constant 0 : i32
    return %arg0, %c0_i32, %c0_i32_0 : i32, i32, i32
  }
}

</mosaic_0001>

<bundles_post_ra>
// kernel: tpu_custom_call.1
= control target key start
LH: loop header
LB: loop body
LE: loop exit
PB: predicated region body
PF: predicated region fallthrough
CT: control target
= control target key end

     0   :  { %7 = vsyncpa [#allocation3], 0  ;;  %s430_s0 = inlined_call_operand.hbm [shape: f32[1,32,128], index: 0, kind: input, shape index: {}]   ;;  %s431_s1 = inlined_call_operand.hbm [shape: s8[1,32,128], index: 1, kind: input, shape index: {}]   ;;  %s432_s2 = inlined_call_operand.hbm [shape: f32[1,32,128], index: 2, kind: output, shape index: {}]  }
   0x1   :  { %8 = vsyncpa [#allocation6], 0 }
   0x2   :  { %9 = vsyncpa [#allocation4], 0  ;;  %s300_s9 = smov [#allocation2]  }
   0x3   :  { %s15_s10 = sshll.u32 %s300_s9, 4  ;;  %s16_s10 = int_to_ptr.vmem [resolvable:$true] %s15_s10 }
   0x4   :  { %s242_s11 = scalar_lea.vmem %s16_s10, 512  ;;  %p247_p1 = scmp.lt.s32.totalorder %s16_s10, %s16_s10 }
   0x5   :  { %p243_p0 = scmp.ne.s32.totalorder %s16_s10, %s242_s11  ;;  %p248_p2 = scmp.lt.s32.totalorder %s242_s11, %s242_s11 }
   0x7   :  { %p249_p3 = por %p248_p2, %p247_p1 }
   0x9   :  { %p250_p4 = pnand %p249_p3, %p243_p0 }
   0xb   :  { %253 = shalt.err (!%p250_p4)
}
   0xc   :  { %s301_s12 = smov 128   ;;  %s302_s13 = smov 8  }
   0xd   :  { %21 = dma.hbm_to_vmem [thread:$0]  %s430_s0, 512, %s16_s10, [#allocation3], %s301_s12, %s301_s12, %s302_s13  }
   0xe   :  { %s303_s16 = smov [#allocation5]  }
   0xf   :  { %s28_s17 = sshll.u32 %s303_s16, 4  ;;  %s29_s17 = int_to_ptr.vmem [resolvable:$true] %s28_s17 }
  0x10   :  { %s262_s18 = scalar_lea.vmem %s29_s17, 128  ;;  %p267_p6 = scmp.lt.s32.totalorder %s29_s17, %s29_s17 }
  0x11   :  { %p263_p5 = scmp.ne.s32.totalorder %s29_s17, %s262_s18  ;;  %p268_p7 = scmp.lt.s32.totalorder %s262_s18, %s262_s18 }
  0x13   :  { %p269_p8 = por %p268_p7, %p267_p6 }
  0x15   :  { %p270_p9 = pnand %p269_p8, %p263_p5 }
  0x17   :  { %273 = shalt.err (!%p270_p9)
}
  0x18   :  { %31 = dma.hbm_to_vmem [thread:$0]  %s431_s1, 128, %s29_s17, [#allocation6]  }
  0x19   :  { %294 = dma.done.wait [#allocation3], 512  }
  0x1a   :  { %295 = vsyncadd [#allocation3], 4294966784 }
  0x1b   :  { %296 = dma.done.wait [#allocation6], 128  }
  0x1c   :  { %297 = vsyncadd [#allocation6], 4294967168  ;;  %v329_v0 = vld [vmem:[#allocation2] sm:$0xff]  ;;  %v331_v1 = vld [vmem:[#allocation2 + $0x8] sm:$0xff]  ;;  %s304_s0 = smov [#allocation7]  }
  0x1d   :  { %v51_v2 = vand.u32 2147483647, %v329_v0  ;;  %v334_v3 = vld [vmem:[#allocation2 + $0x10] sm:$0xff]  ;;  %v52_v4 = vand.u32 2147483647, %v331_v1  ;;  %v338_v11 = vld [vmem:[#allocation2 + $0x18] sm:$0xff] }
  0x1e   :  { %v53_v6 = vand.u32 2147483647, %v334_v3  ;;  %v54_v13 = vand.u32 2147483647, %v338_v11  ;;  %v42_v18 = vld [vmem:[#allocation5] sm:$0xff]  ;;  %v91_v28 = vmax.f32 %v329_v0, 0.0 }
  0x1f   :  { %v55_v5 = vsub.f32 0.0, %v51_v2  ;;  %v56_v7 = vsub.f32 0.0, %v52_v4  ;;  %v43_v22 = vunpack.c.0.s8 %v42_v18  ;;  %v44_v24 = vunpack.c.1.s8 %v42_v18  ;;  %s192_s1 = sshll.u32 %s304_s0, 4  ;;  %s193_s1 = int_to_ptr.vmem [resolvable:$true] %s192_s1 }
  0x20   :  { %v57_v10 = vsub.f32 0.0, %v53_v6  ;;  %v58_v14 = vsub.f32 0.0, %v54_v13  ;;  %v45_v25 = vunpack.c.2.s8 %v42_v18  ;;  %v92_v30 = vmax.f32 %v331_v1, 0.0  ;;  %s274_s21 = scalar_lea.vmem %s193_s1, 512  ;;  %p279_p11 = scmp.lt.s32.totalorder %s193_s1, %s193_s1 }
  0x21   :  { %v59_v8 = vmul.f32 1.442695, %v55_v5  ;;  %v61_v9 = vmul.f32 1.442695, %v56_v7  ;;  %v47_v27 = vcvt.s32.f32 %v43_v22  ;;  %v350_v29 = vcvt.s32.f32 %v44_v24  ;;  %p275_p10 = scmp.ne.s32.totalorder %s193_s1, %s274_s21  ;;  %p280_p12 = scmp.lt.s32.totalorder %s274_s21, %s274_s21 }
  0x22   :  { %v63_v12 = vmul.f32 1.442695, %v57_v10  ;;  %v65_v15 = vmul.f32 1.442695, %v58_v14  ;;  %v355_v35 = vcvt.s32.f32 %v45_v25  ;;  %v93_v39 = vmax.f32 %v334_v3, 0.0 }
  0x23   :  { %210 = vpow2.f32 %v59_v8  ;;  %v95_v32 = vmul.f32 %v47_v27, %v329_v0  ;;  %v163_v34 = vmul.f32 -0.5, %v47_v27  ;;  %v96_v36 = vmul.f32 %v350_v29, %v331_v1  ;;  %p281_p13 = por %p280_p12, %p279_p11 }
  0x24   :  { %212 = vpow2.f32 %v61_v9  ;;  %v164_v38 = vmul.f32 -0.5, %v350_v29  ;;  %v97_v40 = vmul.f32 %v355_v35, %v334_v3  ;;  %vm79_vm0 = vcmp.ge.f32.partialorder %v329_v0, 0.0 }
  0x25   :  { %214 = vpow2.f32 %v63_v12  ;;  %vm80_vm1 = vcmp.ge.f32.partialorder %v331_v1, 0.0  ;;  %vm81_vm2 = vcmp.ge.f32.partialorder %v334_v3, 0.0  ;;  %v99_v42 = vsub.f32 %v91_v28, %v95_v32  ;;  %p282_p0 = pnand %p281_p13, %p275_p10 }
  0x26   :  { %216 = vpow2.f32 %v65_v15  ;;  %v46_v45 = vunpack.c.3.s8 %v42_v18  ;;  %v167_v46 = vadd.f32 0.75, %v163_v34  ;;  %v100_v47 = vsub.f32 %v92_v30, %v96_v36 }
  0x27   :  { %v368_v49 = vadd.f32 0.75, %v164_v38  ;;  %v371_v52 = vsub.f32 %v93_v39, %v97_v40  ;;  %v165_v53 = vmul.f32 -0.5, %v355_v35  ;;  %vm82_vm3 = vcmp.ge.f32.partialorder %v338_v11, 0.0 }
  0x28   :  { %v94_v58 = vmax.f32 %v338_v11, 0.0  ;;  %v50_v62 = vcvt.s32.f32 %v46_v45 }
  0x2a   :  { %v98_v36 = vmul.f32 %v50_v62, %v338_v11 }
  0x30   :  { %v211_v16 = vpop.eup %210 }
  0x31   :  { %v341_v17 = vpop.eup %212  ;;  %v67_v19 = vadd.f32 1.0, %v211_v16  ;;  %v106_v33 = vmul.f32 -0.5, %v211_v16  ;;  %v109_v44 = vand.u32 2147483647, %v211_v16 }
  0x32   :  { %v68_v20 = vadd.f32 1.0, %v341_v17  ;;  %v344_v21 = vpop.eup %214  ;;  %v115_v37 = vmul.f32 -0.5, %v341_v17  ;;  %v118_v51 = vand.u32 2147483647, %v341_v17 }
  0x33   :  { %218 = vrcp.f32 %v67_v19  ;;  %v69_v23 = vadd.f32 1.0, %v344_v21  ;;  %v347_v26 = vpop.eup %216  ;;  %v124_v41 = vmul.f32 -0.5, %v344_v21  ;;  %v107_v43 = vadd.f32 1.0, %v106_v33 }
  0x34   :  { %220 = vlog2.f32 %v67_v19  ;;  %v70_v31 = vadd.f32 1.0, %v347_v26  ;;  %v116_v48 = vadd.f32 1.0, %v115_v37  ;;  %v127_v57 = vand.u32 2147483647, %v344_v21 }
  0x35   :  { %222 = vrcp.f32 %v68_v20  ;;  %v125_v56 = vadd.f32 1.0, %v124_v41  ;;  %v108_v60 = vmul.f32 %v211_v16, %v107_v43  ;;  %vm377_vm4 = vcmp.lt.f32.partialorder %v109_v44, 0.0004427343 }
  0x36   :  { %224 = vlog2.f32 %v68_v20  ;;  %v133_v63 = vmul.f32 -0.5, %v347_v26  ;;  %v117_v7 = vmul.f32 %v341_v17, %v116_v48  ;;  %vm386_vm5 = vcmp.lt.f32.partialorder %v118_v51, 0.0004427343 }
  0x37   :  { %226 = vrcp.f32 %v69_v23  ;;  %vm394_vm6 = vcmp.lt.f32.partialorder %v127_v57, 0.0004427343  ;;  %v169_v33 = vadd.f32 0.75, %v165_v53  ;;  %v136_v37 = vand.u32 2147483647, %v347_v26 }
  0x38   :  { %228 = vlog2.f32 %v69_v23  ;;  %v134_v22 = vadd.f32 1.0, %v133_v63  ;;  %v102_v57 = vsub.f32 %v94_v58, %v98_v36 }
  0x39   :  { %230 = vrcp.f32 %v70_v31  ;;  %vm416_vm7 = vcmp.lt.f32.partialorder %v136_v37, 0.0004427343 }
  0x3a   :  { %232 = vlog2.f32 %v70_v31  ;;  %v135_v44 = vmul.f32 %v347_v26, %v134_v22 }
  0x40   :  { %v219_v50 = vpop.eup %218 }
  0x41   :  { %v221_v54 = vpop.eup %220  ;;  %v83_v55 = vmul.f32 %v219_v50, %v211_v16  ;;  %v126_v16 = vmul.f32 %v344_v21, %v125_v56 }
  0x42   :  { %v223_v59 = vpop.eup %222  ;;  %v105_v5 = vmul.f32 0.6931472, %v221_v54 }
  0x43   :  { %v225_v2 = vpop.eup %224  ;;  %v87_v4 = vsel %vm79_vm0, %v219_v50, %v83_v55  ;;  %v84_v6 = vmul.f32 %v223_v59, %v341_v17 }
  0x44   :  { %v227_v8 = vpop.eup %226  ;;  %v143_v9 = vadd.f32 %v87_v4, %v47_v27  ;;  %v147_v10 = vmul.f32 2.0, %v87_v4  ;;  %v114_v12 = vmul.f32 0.6931472, %v225_v2  ;;  %v111_v23 = vsel %vm377_vm4, %v108_v60, %v105_v5 }
  0x45   :  { %v229_v14 = vpop.eup %228  ;;  %v88_v15 = vsel %vm80_vm1, %v223_v59, %v84_v6  ;;  %v85_v0 = vmul.f32 %v227_v8, %v344_v21  ;;  %v139_v38 = vadd.f32 %v111_v23, %v99_v42 }
  0x46   :  { %v151_v17 = vmul.f32 %v147_v10, %v47_v27  ;;  %v144_v19 = vadd.f32 %v88_v15, %v350_v29  ;;  %v148_v20 = vmul.f32 2.0, %v88_v15  ;;  %v120_v1 = vsel %vm386_vm5, %v117_v7, %v114_v12  ;;  %v231_v21 = vpop.eup %230 }
  0x47   :  { %v89_v24 = vsel %vm81_vm2, %v227_v8, %v85_v0  ;;  %v123_v25 = vmul.f32 0.6931472, %v229_v14  ;;  %v233_v32 = vpop.eup %232  ;;  %v86_v34 = vmul.f32 %v231_v21, %v347_v26  ;;  %v140_v41 = vadd.f32 %v120_v1, %v100_v47 }
  0x48   :  { %v155_v28 = vsub.f32 %v143_v9, %v151_v17  ;;  %v152_v30 = vmul.f32 %v148_v20, %v350_v29  ;;  %v145_v27 = vadd.f32 %v89_v24, %v355_v35  ;;  %v149_v31 = vmul.f32 2.0, %v89_v24 }
  0x49   :  { %v129_v29 = vsel %vm394_vm6, %v126_v16, %v123_v25  ;;  %v90_v43 = vsel %vm82_vm3, %v231_v21, %v86_v34  ;;  %v132_v51 = vmul.f32 0.6931472, %v233_v32 }
  0x4a   :  { %v159_v39 = vmul.f32 %v155_v28, %v155_v28  ;;  %v156_v3 = vsub.f32 %v144_v19, %v152_v30  ;;  %v153_v40 = vmul.f32 %v149_v31, %v355_v35  ;;  %v146_v42 = vadd.f32 %v90_v43, %v50_v62 }
  0x4b   :  { %v150_v54 = vmul.f32 2.0, %v90_v43  ;;  %v166_v35 = vmul.f32 -0.5, %v50_v62  ;;  %v141_v56 = vadd.f32 %v129_v29, %v371_v52  ;;  %v138_v60 = vsel %vm416_vm7, %v135_v44, %v132_v51 }
  0x4c   :  { %v171_v45 = vmul.f32 %v167_v46, %v159_v39  ;;  %v160_v48 = vmul.f32 %v156_v3, %v156_v3  ;;  %v157_v50 = vsub.f32 %v145_v27, %v153_v40  ;;  %v142_v4 = vadd.f32 %v138_v60, %v102_v57 }
  0x4d   :  { %v154_v59 = vmul.f32 %v150_v54, %v50_v62  ;;  %v170_v63 = vadd.f32 0.75, %v166_v35 }
  0x4e   :  { %v175_v47 = vmul.f32 %v171_v45, %v139_v38  ;;  %v172_v55 = vmul.f32 %v368_v49, %v160_v48  ;;  %v161_v11 = vmul.f32 %v157_v50, %v157_v50 }
  0x4f   :  { %v158_v61 = vsub.f32 %v146_v42, %v154_v59 }
  0x50   :  { %183 = vst [vmem:[#allocation7] sm:$0xff] %v175_v47  ;;  %v176_v26 = vmul.f32 %v172_v55, %v140_v41  ;;  %v173_v46 = vmul.f32 %v169_v33, %v161_v11 }
  0x51   :  { %v162_v5 = vmul.f32 %v158_v61, %v158_v61 }
  0x52   :  { %184 = vst [vmem:[#allocation7 + $0x8] sm:$0xff] %v176_v26  ;;  %v177_v2 = vmul.f32 %v173_v46, %v141_v56 }
  0x53   :  { %v174_v49 = vmul.f32 %v170_v63, %v162_v5 }
  0x54   :  { %185 = vst [vmem:[#allocation7 + $0x10] sm:$0xff] %v177_v2 }
  0x55   :  { %v178_v52 = vmul.f32 %v174_v49, %v142_v4 }
  0x57   :  { %186 = vst [vmem:[#allocation7 + $0x18] sm:$0xff] %v178_v52 }
  0x58   :  { %285 = shalt.err (!%p282_p0)
}
  0x59   :  { %198 = dma.vmem_to_hbm [thread:$0]  %s193_s1, 512, %s432_s2, [#allocation4], %s301_s12, %s301_s12, %s302_s13  }
  0x5a   :  { %298 = dma.done.wait [#allocation4], 512  }
  0x5b   :  { %299 = vsyncadd [#allocation4], 4294966784 }
  0x5c   :  { %202 = vsyncpa [#allocation3], 1 }
  0x5d   :  { %203 = vsyncpa [#allocation6], 1 }
  0x5e   :  { %204 = vsyncpa [#allocation4], 1 }

</bundles_post_ra>
